<compile_context>
chip_gen: v7x
topology: tpu7x:2x2x1
jax: 0.10.0
libtpu: 0.0.40
codegen_flags: <defaults>
</compile_context>

<pallas_src>
import functools

import jax
import jax.numpy as jnp
from jax.experimental import pallas as pl
from jax.experimental.pallas import tpu as pltpu


# ----------------------------------------------------------------------------
# Kernel 1: per-batch-tile transposed logits  (tanh(x @ W1 + b1) @ W2 + b2).T
# ----------------------------------------------------------------------------
def _logits_kernel(x_ref, w1_ref, b1_ref, w2_ref, b2_ref, o_ref):
    # x is read from HBM as f32 (one read per row) and cast to bf16 here so
    # both matmuls run on the native bf16 MXU path; accumulate in f32.
    xb = x_ref[...].astype(jnp.bfloat16)                       # (tb, 784)
    y1 = jnp.dot(xb, w1_ref[...], preferred_element_type=jnp.float32)
    h = jnp.tanh(y1 + b1_ref[...])                             # EUP, (tb, 260)
    y2 = jnp.dot(h.astype(jnp.bfloat16), w2_ref[...],
                 preferred_element_type=jnp.float32)           # (tb, 10)
    # Small XLU transpose (tb,10)->(10,tb): lane-dense output stores, and the
    # downstream batch-axis reduction becomes a lane-axis reduction.
    o_ref[...] = (y2 + b2_ref[...]).T


# ----------------------------------------------------------------------------
# Kernel 2: log_softmax over the batch axis on the transposed (10, B) logits.
# Batch is the last (lane) axis, so the reduction is lane-dense and the whole
# block is only ~16*B*4 bytes in VMEM.
# ----------------------------------------------------------------------------
def _log_softmax_batch_kernel(y_ref, o_ref):
    y = y_ref[...]                                             # (10, B) f32
    m = jnp.max(y, axis=-1, keepdims=True)
    z = y - m
    lse = jnp.log(jnp.sum(jnp.exp(z), axis=-1, keepdims=True))
    o_ref[...] = z - lse


def _round_up(n, m):
    return ((n + m - 1) // m) * m


# ----------------------------------------------------------------------------
# Wrapper
# ----------------------------------------------------------------------------
@functools.partial(jax.jit, static_argnames=("tb",))
def netfull_forward(x_nchw, w1, b1, w2, b2, *, tb=2048):
    """x_nchw: (B, 1, 28, 28) float32.  Returns (B, 10) float32 log-probs."""
    B = x_nchw.shape[0]
    x = x_nchw.reshape(B, -1)                       # == x.view(x.size(0), -1)
    x = x.astype(jnp.float32)                       # f32 in HBM; bf16 cast in-kernel
    in_dim = x.shape[1]                             # 784
    hid_dim = w1.shape[1]                           # 260
    out_dim = w2.shape[1]                           # 10

    # Weights bf16 at rest (tiny one-time cast); biases / accumulation f32.
    w1 = w1.astype(jnp.bfloat16)
    w2 = w2.astype(jnp.bfloat16)
    b1 = b1.astype(jnp.float32)
    b2 = b2.astype(jnp.float32)

    # Batch tile.  Must be a multiple of 128 when tiling (it is the lane dim of
    # the transposed output block); a single full-extent block is used for
    # small B.  Ensure >=2 grid steps for large B so both v7x TCs get work.
    if B <= 256:
        tb_eff = B
    else:
        tb_eff = min(tb, _round_up(B, 128))
        if tb_eff >= B:
            tb_eff = max(128, _round_up(pl.cdiv(B, 2), 128))
    grid = (pl.cdiv(B, tb_eff),)                    # ragged last tile OK

    cost = pl.CostEstimate(
        flops=2 * B * (in_dim * hid_dim + hid_dim * out_dim),
        transcendentals=B * hid_dim,
        bytes_accessed=int(x.size * 4 + w1.size * 2 + w2.size * 2
                           + b1.size * 4 + b2.size * 4 + B * out_dim * 4),
    )

    # TODO(synk): on v7x, pipeline_mode=pl.Buffered(1) on the weight/bias specs
    # would reclaim their second VMEM buffer (~0.7 MiB headroom); kept default
    # double-buffering here to stay on the validated lowering path.
    logits_t = pl.pallas_call(
        _logits_kernel,
        out_shape=jax.ShapeDtypeStruct((out_dim, B), jnp.float32),
        grid=grid,
        in_specs=[
            pl.BlockSpec((tb_eff, in_dim), lambda i: (i, 0)),     # x tile (f32)
            pl.BlockSpec((in_dim, hid_dim), lambda i: (0, 0)),    # W1 resident
            pl.BlockSpec((1, hid_dim), lambda i: (0, 0)),         # b1 resident
            pl.BlockSpec((hid_dim, out_dim), lambda i: (0, 0)),   # W2 resident
            pl.BlockSpec((1, out_dim), lambda i: (0, 0)),         # b2 resident
        ],
        out_specs=pl.BlockSpec((out_dim, tb_eff), lambda i: (0, i)),
        compiler_params=pltpu.CompilerParams(
            dimension_semantics=("parallel",),      # 2-TC split on v7x
            vmem_limit_bytes=32 << 20,              # ~24 MiB actual @ tb=2048
        ),
        cost_estimate=cost,
    )(x, w1, b1, w2, b2)

    # Second pass: log_softmax over the batch axis (dim=0 of the PyTorch
    # module), computed lane-dense on the (10, B) layout.
    logp_t = pl.pallas_call(
        _log_softmax_batch_kernel,
        out_shape=jax.ShapeDtypeStruct((out_dim, B), jnp.float32),
        in_specs=[pl.BlockSpec((out_dim, B), lambda: (0, 0))],
        out_specs=pl.BlockSpec((out_dim, B), lambda: (0, 0)),
        compiler_params=pltpu.CompilerParams(vmem_limit_bytes=32 << 20),
    )(logits_t)

    return logp_t.T                                 # (B, 10), matches PyTorch


def init_params(key):
    """Deterministic init matching PyTorch Linear shapes (stored transposed)."""
    k1, k2, k3, k4 = jax.random.split(key, 4)
    in_dim, hid_dim, out_dim = 28 * 28, 260, 10
    s1 = 1.0 / jnp.sqrt(in_dim)
    s2 = 1.0 / jnp.sqrt(hid_dim)
    w1 = jax.random.uniform(k1, (in_dim, hid_dim), jnp.float32, -s1, s1)
    b1 = jax.random.uniform(k2, (1, hid_dim), jnp.float32, -s1, s1)
    w2 = jax.random.uniform(k3, (hid_dim, out_dim), jnp.float32, -s2, s2)
    b2 = jax.random.uniform(k4, (1, out_dim), jnp.float32, -s2, s2)
    return w1, b1, w2, b2


if __name__ == "__main__":
    key = jax.random.PRNGKey(0)
    kx, kp = jax.random.split(key)

    B = 8
    x = jax.random.normal(kx, (B, 1, 28, 28), jnp.float32)  # NCHW, like MNIST
    w1, b1, w2, b2 = init_params(kp)

    out = netfull_forward(x, w1, b1, w2, b2)
    jax.block_until_ready(out)
    assert out.shape == (B, 10)

    # Reference 1: full-f32 math (relaxed tolerance -> bf16 weights/activations).
    xf = x.reshape(B, -1)
    y2_f32 = jnp.tanh(xf @ w1 + b1) @ w2 + b2
    ref_f32 = jax.nn.log_softmax(y2_f32, axis=0)
    assert jnp.allclose(out, ref_f32, atol=5e-2, rtol=5e-2)

    # Reference 2: same bf16 math in plain JAX (tight tolerance).
    xb = xf.astype(jnp.bfloat16)
    h_bf = jnp.tanh(
        jnp.dot(xb, w1.astype(jnp.bfloat16),
                preferred_element_type=jnp.float32) + b1)
    y2_bf = jnp.dot(h_bf.astype(jnp.bfloat16), w2.astype(jnp.bfloat16),
                    preferred_element_type=jnp.float32) + b2
    ref_bf = jax.nn.log_softmax(y2_bf, axis=0)
    assert jnp.allclose(out, ref_bf, atol=1e-3, rtol=1e-3)

    print("KERNEL_OK")
</pallas_src>

<mosaic_0001>
module attributes {stable_mosaic.version = 11 : i64} {
  func.func @_logits_kernel(%arg0: i32, %arg1: memref<8x784xf32, #tpu.memory_space<vmem>>, %arg2: memref<784x260xbf16, #tpu.memory_space<vmem>>, %arg3: memref<1x260xf32, #tpu.memory_space<vmem>>, %arg4: memref<260x10xbf16, #tpu.memory_space<vmem>>, %arg5: memref<1x10xf32, #tpu.memory_space<vmem>>, %arg6: memref<10x8xf32, #tpu.memory_space<vmem>>) attributes {dimension_semantics = [#tpu.dimension_semantics<parallel>], iteration_bounds = array<i64: 1>, scalar_prefetch = 0 : i64, scratch_operands = 0 : i64, tpu.core_type = #tpu.core_type<tc>, window_params = [{transform_indices = @transform_0, window_bounds = array<i64: 8, 784>}, {pipeline_mode = #tpu.pipeline_mode<synchronous>, transform_indices = @transform_1, window_bounds = array<i64: 784, 260>}, {pipeline_mode = #tpu.pipeline_mode<synchronous>, transform_indices = @transform_2, window_bounds = array<i64: 1, 260>}, {pipeline_mode = #tpu.pipeline_mode<synchronous>, transform_indices = @transform_3, window_bounds = array<i64: 260, 10>}, {pipeline_mode = #tpu.pipeline_mode<synchronous>, transform_indices = @transform_4, window_bounds = array<i64: 1, 10>}, {transform_indices = @transform_5, window_bounds = array<i64: 10, 8>}]} {
    %c0 = arith.constant 0 : index
    %c0_0 = arith.constant 0 : index
    %0 = vector.load %arg1[%c0, %c0_0] : memref<8x784xf32, #tpu.memory_space<vmem>>, vector<8x784xf32>
    %1 = arith.truncf %0 : vector<8x784xf32> to vector<8x784xbf16>
    %c0_1 = arith.constant 0 : index
    %c0_2 = arith.constant 0 : index
    %2 = vector.load %arg2[%c0_1, %c0_2] : memref<784x260xbf16, #tpu.memory_space<vmem>>, vector<784x260xbf16>
    %cst = arith.constant dense<0.000000e+00> : vector<8x260xf32>
    %3 = tpu.matmul %1, %2, %cst {dimension_numbers = #tpu.dot_dimension_numbers<[1], [0], [0], [1], [0, 0, 1, 1], [], []>} : vector<8x784xbf16>, vector<784x260xbf16>, vector<8x260xf32> -> vector<8x260xf32>
    %c0_3 = arith.constant 0 : index
    %c0_4 = arith.constant 0 : index
    %4 = vector.load %arg3[%c0_3, %c0_4] : memref<1x260xf32, #tpu.memory_space<vmem>>, vector<1x260xf32>
    %5 = vector.broadcast %4 : vector<1x260xf32> to vector<8x260xf32>
    %6 = arith.addf %3, %5 : vector<8x260xf32>
    %7 = math.tanh %6 : vector<8x260xf32>
    %8 = arith.truncf %7 : vector<8x260xf32> to vector<8x260xbf16>
    %c0_5 = arith.constant 0 : index
    %c0_6 = arith.constant 0 : index
    %9 = vector.load %arg4[%c0_5, %c0_6] : memref<260x10xbf16, #tpu.memory_space<vmem>>, vector<260x10xbf16>
    %cst_7 = arith.constant dense<0.000000e+00> : vector<8x10xf32>
    %10 = tpu.matmul %8, %9, %cst_7 {dimension_numbers = #tpu.dot_dimension_numbers<[1], [0], [0], [1], [0, 0, 1, 1], [], []>} : vector<8x260xbf16>, vector<260x10xbf16>, vector<8x10xf32> -> vector<8x10xf32>
    %c0_8 = arith.constant 0 : index
    %c0_9 = arith.constant 0 : index
    %11 = vector.load %arg5[%c0_8, %c0_9] : memref<1x10xf32, #tpu.memory_space<vmem>>, vector<1x10xf32>
    %12 = vector.broadcast %11 : vector<1x10xf32> to vector<8x10xf32>
    %13 = arith.addf %10, %12 : vector<8x10xf32>
    %14 = tpu.transpose %13, [1, 0] : vector<8x10xf32> -> vector<10x8xf32>
    %c0_10 = arith.constant 0 : index
    %c0_11 = arith.constant 0 : index
    %15 = vector.load %arg6[%c0_10, %c0_11] : memref<10x8xf32, #tpu.memory_space<vmem>>, vector<10x8xf32>
    tpu.vector_store %arg6[%c0_10, %c0_11], %14 {strides = array<i32>} : memref<10x8xf32, #tpu.memory_space<vmem>>, vector<10x8xf32>,
    return
  }
  func.func @transform_0(%arg0: i32) -> (i32, i32) {
    %c0_i32 = arith.constant 0 : i32
    %c0_i32_0 = arith.constant 0 : i32
    return %arg0, %c0_i32 : i32, i32
  }
  func.func @transform_1(%arg0: i32) -> (i32, i32) {
    %c0_i32 = arith.constant 0 : i32
    %c0_i32_0 = arith.constant 0 : i32
    %c0_i32_1 = arith.constant 0 : i32
    return %c0_i32, %c0_i32_0 : i32, i32
  }
  func.func @transform_2(%arg0: i32) -> (i32, i32) {
    %c0_i32 = arith.constant 0 : i32
    %c0_i32_0 = arith.constant 0 : i32
    %c0_i32_1 = arith.constant 0 : i32
    return %c0_i32, %c0_i32_0 : i32, i32
  }
  func.func @transform_3(%arg0: i32) -> (i32, i32) {
    %c0_i32 = arith.constant 0 : i32
    %c0_i32_0 = arith.constant 0 : i32
    %c0_i32_1 = arith.constant 0 : i32
    return %c0_i32, %c0_i32_0 : i32, i32
  }
  func.func @transform_4(%arg0: i32) -> (i32, i32) {
    %c0_i32 = arith.constant 0 : i32
    %c0_i32_0 = arith.constant 0 : i32
    %c0_i32_1 = arith.constant 0 : i32
    return %c0_i32, %c0_i32_0 : i32, i32
  }
  func.func @transform_5(%arg0: i32) -> (i32, i32) {
    %c0_i32 = arith.constant 0 : i32
    %c0_i32_0 = arith.constant 0 : i32
    return %c0_i32, %arg0 : i32, i32
  }
}

module attributes {stable_mosaic.version = 11 : i64} {
  func.func @_log_softmax_batch_kernel(%arg0: memref<10x8xf32, #tpu.memory_space<vmem>>, %arg1: memref<10x8xf32, #tpu.memory_space<vmem>>) attributes {dimension_semantics = [], scalar_prefetch = 0 : i64, scratch_operands = 0 : i64, tpu.core_type = #tpu.core_type<tc>} {
    %c0 = arith.constant 0 : index
    %c0_0 = arith.constant 0 : index
    %0 = vector.load %arg0[%c0, %c0_0] : memref<10x8xf32, #tpu.memory_space<vmem>>, vector<10x8xf32>
    %cst = arith.constant dense<0xFF800000> : vector<10xf32>
    %1 = vector.multi_reduction <maximumf>, %0, %cst [1] : vector<10x8xf32> to vector<10xf32>
    %2 = vector.shape_cast %1 : vector<10xf32> to vector<10x1xf32>
    %3 = vector.broadcast %2 : vector<10x1xf32> to vector<10x8xf32>
    %4 = arith.subf %0, %3 : vector<10x8xf32>
    %5 = math.exp %4 : vector<10x8xf32>
    %cst_1 = arith.constant dense<0.000000e+00> : vector<10xf32>
    %6 = vector.multi_reduction <add>, %5, %cst_1 [1] : vector<10x8xf32> to vector<10xf32>
    %7 = vector.shape_cast %6 : vector<10xf32> to vector<10x1xf32>
    %8 = math.log %7 : vector<10x1xf32>
    %9 = vector.broadcast %8 : vector<10x1xf32> to vector<10x8xf32>
    %10 = arith.subf %4, %9 : vector<10x8xf32>
    %c0_2 = arith.constant 0 : index
    %c0_3 = arith.constant 0 : index
    %11 = vector.load %arg1[%c0_2, %c0_3] : memref<10x8xf32, #tpu.memory_space<vmem>>, vector<10x8xf32>
    tpu.vector_store %arg1[%c0_2, %c0_3], %10 {strides = array<i32>} : memref<10x8xf32, #tpu.memory_space<vmem>>, vector<10x8xf32>,
    return
  }
}

</mosaic_0001>

<bundles_post_ra>
// kernel: netfull_forward.3
= control target key start
LH: loop header
LB: loop body
LE: loop exit
PB: predicated region body
PF: predicated region fallthrough
CT: control target
= control target key end

     0   :  { %vm10_vm0 = vcmask 64512   ;;  %vm14_vm1 = vcmask 58368   ;;  %s78_s0 = inlined_call_operand.vmem [shape: f32[10,8], index: 0, kind: input, shape index: {}]   ;;  %s79_s1 = inlined_call_operand.vmem [shape: f32[10,8], index: 1, kind: output, shape index: {}]  }
   0x1   :  { %v8_v0 = vld [vmem:[%s78_s0] sm:$0xff]  ;;  %v9_v1 = vld [vmem:[%s78_s0 + $0x8] sm:$0x3] }
   0x2   :  { %v11_v2 = vsel %vm10_vm0, %v8_v0, -inf  ;;  %v15_v3 = vsel %vm14_vm1, %v9_v1, -inf }
   0x3   :  { %12 = vmax.xlane.f32.xlu0 %v11_v2 }
   0x7   :  { %16 = vmax.xlane.f32.xlu0 %v15_v3 }
  0x90   :  { %v13_v4 = vpop.xlane.xlu0 %12 }
  0x91   :  { %v18_v5 = vsub.f32 %v8_v0, %v13_v4 }
  0x93   :  { %v20_v6 = vmul.f32 1.442695, %v18_v5 }
  0x94   :  { %v17_v7 = vpop.xlane.xlu0 %16 }
  0x95   :  { %42 = vpow2.f32 %v20_v6  ;;  %v19_v8 = vsub.f32 %v9_v1, %v17_v7 }
  0x97   :  { %v22_v9 = vmul.f32 1.442695, %v19_v8 }
  0x99   :  { %44 = vpow2.f32 %v22_v9 }
  0x9f   :  { %v43_v10 = vpop.eup %42 }
  0xa0   :  { %v24_v11 = vsel %vm10_vm0, %v43_v10, 0.0 }
  0xa1   :  { %25 = vadd.xlane.f32.xlu1 %v24_v11 }
  0xa3   :  { %v45_v12 = vpop.eup %44 }
  0xa4   :  { %v27_v13 = vsel %vm14_vm1, %v45_v12, 0.0 }
  0xa5   :  { %28 = vadd.xlane.f32.xlu1 %v27_v13 }
 0x12e   :  { %v26_v14 = vpop.xlane.xlu1 %25 }
 0x12f   :  { %46 = vlog2.f32 %v26_v14 }
 0x132   :  { %v29_v15 = vpop.xlane.xlu1 %28 }
 0x133   :  { %48 = vlog2.f32 %v29_v15 }
 0x139   :  { %v47_v16 = vpop.eup %46 }
 0x13a   :  { %v31_v17 = vmul.f32 0.6931472, %v47_v16 }
 0x13c   :  { %v34_v18 = vsub.f32 %v18_v5, %v31_v17 }
 0x13d   :  { %v49_v19 = vpop.eup %48 }
 0x13e   :  { %36 = vst.msk [vmem:[%s79_s1] sm:$0xff] %vm10_vm0, %v34_v18  ;;  %v33_v20 = vmul.f32 0.6931472, %v49_v19 }
 0x140   :  { %v35_v21 = vsub.f32 %v19_v8, %v33_v20 }
 0x142   :  { %37 = vst.msk [vmem:[%s79_s1 + $0x8] sm:$0x3] %vm14_vm1, %v35_v21 }

// kernel: netfull_forward.2
= control target key start
LH: loop header
LB: loop body
LE: loop exit
PB: predicated region body
PF: predicated region fallthrough
CT: control target
= control target key end

     0   :  { %v2139_v1 = vmov 0   ;;  %vm1032_vm0 = vcmask 130048   ;;  %vm2141_vm1 = vmmov 0   ;;  %vm1509_vm2 = vcmask 1041408   ;;  %s2723_s1 = inlined_call_operand.vmem [shape: bf16[784,260], index: 1, kind: input, shape index: {}]   ;;  %s2724_s0 = inlined_call_operand.vmem [shape: f32[8,784], index: 0, kind: input, shape index: {}]   ;;  %s2725_s3 = inlined_call_operand.vmem [shape: bf16[260,10], index: 3, kind: input, shape index: {}]   ;;  %s2726_s2 = inlined_call_operand.vmem [shape: f32[1,260], index: 2, kind: input, shape index: {}]   ;;  %s2727_s4 = inlined_call_operand.vmem [shape: f32[1,10], index: 4, kind: input, shape index: {}]   ;;  %s2728_s5 = inlined_call_operand.vmem [shape: f32[10,8], index: 5, kind: output, shape index: {}]  }
   0x1   :  { %v1920_v0 = vld [vmem:[%s2723_s1 + $0x4] ss:$12 sps:$4 sm:$0xff]   ;;  %1191 = vmatprep.mubr.bf16.mxu1 %v2139_v1  ;;  %v1922_v2 = vld [vmem:[%s2723_s1] ss:$12 sps:$4 sm:$0xff]   ;;  %v1923_v3 = vld [vmem:[%s2723_s1 + $0x1c] ss:$12 sps:$4 sm:$0xff]  }
   0x2   :  { %1036 = vmatprep.subr.bf16.mxu0 %v1920_v0  ;;  %v1925_v4 = vld [vmem:[%s2723_s1 + $0x18] ss:$12 sps:$4 sm:$0xff]   ;;  %v1926_v5 = vld [vmem:[%s2723_s1 + $0x34] ss:$12 sps:$4 sm:$0xff]   ;;  %v1928_v6 = vld [vmem:[%s2723_s1 + $0x30] ss:$12 sps:$4 sm:$0xff]  }
   0x3   :  { %1037 = vmatpush1.bf16.msra.mxu0 %v1922_v2  ;;  %v1929_v7 = vld [vmem:[%s2723_s1 + $0x4c] ss:$12 sps:$4 sm:$0xff]   ;;  %v1931_v8 = vld [vmem:[%s2723_s1 + $0x48] ss:$12 sps:$4 sm:$0xff]   ;;  %v1932_v9 = vld [vmem:[%s2723_s1 + $0x64] ss:$12 sps:$4 sm:$0xff]  }
   0x4   :  { %1038 = vmatprep.subr.bf16.mxu0 %v1923_v3  ;;  %v1946_v10 = vld [vmem:[%s2723_s1 + $0x484] ss:$12 sps:$4 sm:$0xff]   ;;  %v1949_v11 = vld [vmem:[%s2723_s1 + $0x480] ss:$12 sps:$4 sm:$0xff]   ;;  %v1935_v13 = vld [vmem:[%s2723_s1 + $0x7c] ss:$12 sps:$4 sm:$0xff]  }
   0x5   :  { %v1934_v12 = vld [vmem:[%s2723_s1 + $0x60] ss:$12 sps:$4 sm:$0xff]   ;;  %1159 = vmatprep.subr.bf16.mxu1 %v1946_v10  ;;  %v1952_v14 = vld [vmem:[%s2723_s1 + $0xc8] ss:$12 sps:$4 sm:$0xff]   ;;  %v1937_v18 = vld [vmem:[%s2723_s1 + $0x78] ss:$12 sps:$4 sm:$0xff]  }
   0x6   :  { %1160 = vmatpush1.bf16.msra.mxu1 %v1949_v11  ;;  %v27_v15 = vld [vmem:[%s2724_s0 + $0x30] sm:$0xff]  ;;  %v1957_v19 = vld [vmem:[%s2723_s1 + $0xe0] ss:$12 sps:$4 sm:$0xff]   ;;  %v1962_v23 = vld [vmem:[%s2723_s1 + $0xf8] ss:$12 sps:$4 sm:$0xff]   ;;  %vm1505_vm3 = vcmask 31744  }
   0x7   :  { %1039 = vmatpush1.bf16.msra.mxu0 %v1925_v4  ;;  %v2217_v16 = vpack.c.bf16 %v27_v15, %v27_v15  ;;  %v1954_v17 = vld [vmem:[%s2723_s1 + $0x8] ss:$12 sps:$4 sm:$0xff]   ;;  %1801 = vmatprep.subr.bf16.mxu1 %v1952_v14  ;;  %v1959_v21 = vld [vmem:[%s2723_s1 + $0x20] ss:$12 sps:$4 sm:$0xff]   ;;  %v1940_v22 = vld [vmem:[%s2723_s1 + $0x90] ss:$12 sps:$4 sm:$0xff]  }
   0x8   :  { %1040 = vmatprep.subr.bf16.mxu0 %v1926_v5  ;;  %v1938_v20 = vld [vmem:[%s2723_s1 + $0x94] ss:$12 sps:$4 sm:$0xff]   ;;  %v1964_v24 = vld [vmem:[%s2723_s1 + $0x38] ss:$12 sps:$4 sm:$0xff]   ;;  %v1967_v27 = vld [vmem:[%s2723_s1 + $0x110] ss:$12 sps:$4 sm:$0xff]  }
   0x9   :  { %1780 = vmatmul.mubr.msk.bf16.vlgmr.msra.gmra.mrb[0].mxu1 %vm1032_vm0, %v2217_v16  ;;  %v1941_v25 = vld [vmem:[%s2723_s1 + $0xac] ss:$12 sps:$4 sm:$0xff]   ;;  %v1943_v26 = vld [vmem:[%s2723_s1 + $0xa8] ss:$12 sps:$4 sm:$0xff]   ;;  %v1944_v28 = vld [vmem:[%s2723_s1 + $0xc4] ss:$12 sps:$4 sm:$0xff]  }
   0xa   :  { %1802 = vmatpush3.bf16.msra.mxu1 %v1954_v17  ;;  %v1969_v29 = vld [vmem:[%s2723_s1 + $0x50] ss:$12 sps:$4 sm:$0xff]   ;;  %v1972_v30 = vld [vmem:[%s2723_s1 + $0x128] ss:$12 sps:$4 sm:$0xff]   ;;  %v1948_v31 = vld [vmem:[%s2723_s1 + $0xc0] ss:$12 sps:$4 sm:$0xff]  }
   0xb   :  { %1041 = vmatpush1.bf16.msra.mxu0 %v1928_v6  ;;  %1803 = vmatprep.subr.bf16.mxu1 %v1957_v19  ;;  %v1974_v32 = vld [vmem:[%s2723_s1 + $0x68] ss:$12 sps:$4 sm:$0xff]   ;;  %v1977_v34 = vld [vmem:[%s2723_s1 + $0x140] ss:$12 sps:$4 sm:$0xff]   ;;  %v1953_v35 = vld [vmem:[%s2723_s1 + $0xd8] ss:$12 sps:$4 sm:$0xff]  }
   0xc   :  { %1042 = vmatprep.subr.bf16.mxu0 %v1929_v7  ;;  %v1950_v33 = vld [vmem:[%s2723_s1 + $0xdc] ss:$12 sps:$4 sm:$0xff]   ;;  %v1955_v36 = vld [vmem:[%s2723_s1 + $0xf4] ss:$12 sps:$4 sm:$0xff]   ;;  %v1982_v38 = vld [vmem:[%s2723_s1 + $0x158] ss:$12 sps:$4 sm:$0xff]  }
   0xd   :  { %v1979_v37 = vld [vmem:[%s2723_s1 + $0x80] ss:$12 sps:$4 sm:$0xff]   ;;  %v1958_v40 = vld [vmem:[%s2723_s1 + $0xf0] ss:$12 sps:$4 sm:$0xff]   ;;  %v1984_v43 = vld [vmem:[%s2723_s1 + $0x98] ss:$12 sps:$4 sm:$0xff]  }
   0xe   :  { %1804 = vmatpush3.bf16.msra.mxu1 %v1959_v21  ;;  %v22_v39 = vld [vmem:[%s2724_s0 + $0x8] sm:$0xff]  ;;  %v1988_v44 = vld [vmem:[%s2723_s1 + $0x170] ss:$12 sps:$4 sm:$0xff]   ;;  %v21_v49 = vld [vmem:[%s2724_s0] sm:$0xff]  ;;  %vm1625_vm4 = vcmask 64512   ;;  %vm1627_vm5 = vcmask 58368  }
   0xf   :  { %1043 = vmatpush1.bf16.msra.mxu0 %v1931_v8  ;;  %1805 = vmatprep.subr.bf16.mxu1 %v1962_v23  ;;  %v29_v41 = vpack.c.bf16 %v22_v39, %v22_v39  ;;  %v1960_v42 = vld [vmem:[%s2723_s1 + $0x10c] ss:$12 sps:$4 sm:$0xff]   ;;  %v1963_v45 = vld [vmem:[%s2723_s1 + $0x108] ss:$12 sps:$4 sm:$0xff]   ;;  %v1965_v46 = vld [vmem:[%s2723_s1 + $0x124] ss:$12 sps:$4 sm:$0xff]   ;;  %v28_v53 = vpack.c.bf16 %v21_v49, %v21_v49 }
  0x10   :  { %1044 = vmatprep.subr.bf16.mxu0 %v1932_v9  ;;  %v1989_v47 = vld [vmem:[%s2723_s1 + $0xb0] ss:$12 sps:$4 sm:$0xff]   ;;  %v1993_v48 = vld [vmem:[%s2723_s1 + $0x248] ss:$12 sps:$4 sm:$0xff]   ;;  %v1968_v50 = vld [vmem:[%s2723_s1 + $0x120] ss:$12 sps:$4 sm:$0xff]  }
  0x11   :  { %1068 = vmatprep.mubr.bf16.mxu0 %v29_v41  ;;  %1232 = vmatprep.mubr.bf16.mxu1 %v29_v41  ;;  %v1994_v51 = vld [vmem:[%s2723_s1 + $0x188] ss:$12 sps:$4 sm:$0xff]   ;;  %v1998_v54 = vld [vmem:[%s2723_s1 + $0x260] ss:$12 sps:$4 sm:$0xff]   ;;  %v1973_v55 = vld [vmem:[%s2723_s1 + $0x138] ss:$12 sps:$4 sm:$0xff]  }
  0x12   :  { %1806 = vmatpush3.bf16.msra.mxu1 %v1964_v24  ;;  %v1970_v52 = vld [vmem:[%s2723_s1 + $0x13c] ss:$12 sps:$4 sm:$0xff]   ;;  %v1975_v56 = vld [vmem:[%s2723_s1 + $0x154] ss:$12 sps:$4 sm:$0xff]   ;;  %v2003_v58 = vld [vmem:[%s2723_s1 + $0x278] ss:$12 sps:$4 sm:$0xff]  }
  0x13   :  { %1045 = vmatpush1.bf16.msra.mxu0 %v1934_v12  ;;  %1807 = vmatprep.subr.bf16.mxu1 %v1967_v27  ;;  %v1999_v57 = vld [vmem:[%s2723_s1 + $0x1a0] ss:$12 sps:$4 sm:$0xff]   ;;  %v1978_v59 = vld [vmem:[%s2723_s1 + $0x150] ss:$12 sps:$4 sm:$0xff]   ;;  %v2004_v61 = vld [vmem:[%s2723_s1 + $0x1b8] ss:$12 sps:$4 sm:$0xff]  }
  0x14   :  { %1046 = vmatprep.subr.bf16.mxu0 %v1935_v13  ;;  %v1980_v60 = vld [vmem:[%s2723_s1 + $0x16c] ss:$12 sps:$4 sm:$0xff]   ;;  %v2008_v62 = vld [vmem:[%s2723_s1 + $0x290] ss:$12 sps:$4 sm:$0xff]   ;;  %v1983_v63 = vld [vmem:[%s2723_s1 + $0x168] ss:$12 sps:$4 sm:$0xff]  }
  0x15   :  { %v1987_v0 = vld [vmem:[%s2723_s1 + $0x184] ss:$12 sps:$4 sm:$0xff]   ;;  %v2013_v2 = vld [vmem:[%s2723_s1 + $0x2a8] ss:$12 sps:$4 sm:$0xff]   ;;  %v1985_v3 = vld [vmem:[%s2723_s1 + $0x180] ss:$12 sps:$4 sm:$0xff]  }
  0x16   :  { %1808 = vmatpush3.bf16.msra.mxu1 %v1969_v29  ;;  %v2009_v1 = vld [vmem:[%s2723_s1 + $0x1d0] ss:$12 sps:$4 sm:$0xff]   ;;  %v2014_v5 = vld [vmem:[%s2723_s1 + $0x1e8] ss:$12 sps:$4 sm:$0xff]   ;;  %v2018_v6 = vld [vmem:[%s2723_s1 + $0x2c0] ss:$12 sps:$4 sm:$0xff]  }
  0x17   :  { %1047 = vmatpush1.bf16.msra.mxu0 %v1937_v18  ;;  %1809 = vmatprep.subr.bf16.mxu1 %v1972_v30  ;;  %v1992_v4 = vld [vmem:[%s2723_s1 + $0x19c] ss:$12 sps:$4 sm:$0xff]   ;;  %v1990_v7 = vld [vmem:[%s2723_s1 + $0x198] ss:$12 sps:$4 sm:$0xff]   ;;  %v2019_v8 = vld [vmem:[%s2723_s1 + $0x200] ss:$12 sps:$4 sm:$0xff]  }
  0x18   :  { %1048 = vmatprep.subr.bf16.mxu0 %v1938_v20  ;;  %v1997_v9 = vld [vmem:[%s2723_s1 + $0x1b4] ss:$12 sps:$4 sm:$0xff]   ;;  %v2023_v10 = vld [vmem:[%s2723_s1 + $0x2d8] ss:$12 sps:$4 sm:$0xff]   ;;  %v1995_v12 = vld [vmem:[%s2723_s1 + $0x1b0] ss:$12 sps:$4 sm:$0xff]  }
  0x19   :  { %v24_v11 = vld [vmem:[%s2724_s0 + $0x18] sm:$0xff]  ;;  %v2000_v18 = vld [vmem:[%s2723_s1 + $0x1c8] ss:$12 sps:$4 sm:$0xff]   ;;  %v2007_v19 = vld [vmem:[%s2723_s1 + $0x1e4] ss:$12 sps:$4 sm:$0xff]  }
  0x1a   :  { %1810 = vmatpush3.bf16.msra.mxu1 %v1974_v32  ;;  %v31_v13 = vpack.c.bf16 %v24_v11, %v24_v11  ;;  %v2024_v14 = vld [vmem:[%s2723_s1 + $0x218] ss:$12 sps:$4 sm:$0xff]   ;;  %v2028_v17 = vld [vmem:[%s2723_s1 + $0x2f0] ss:$12 sps:$4 sm:$0xff]   ;;  %v2005_v23 = vld [vmem:[%s2723_s1 + $0x1e0] ss:$12 sps:$4 sm:$0xff]  }
  0x1b   :  { %1049 = vmatpush1.bf16.msra.mxu0 %v1940_v22  ;;  %1811 = vmatprep.subr.bf16.mxu1 %v1977_v34  ;;  %v2002_v15 = vld [vmem:[%s2723_s1 + $0x1cc] ss:$12 sps:$4 sm:$0xff]   ;;  %v2029_v20 = vld [vmem:[%s2723_s1 + $0x230] ss:$12 sps:$4 sm:$0xff]   ;;  %v2033_v22 = vld [vmem:[%s2723_s1 + $0x3c8] ss:$12 sps:$4 sm:$0xff]  }
  0x1c   :  { %1050 = vmatprep.subr.bf16.mxu0 %v1941_v25  ;;  %v23_v21 = vld [vmem:[%s2724_s0 + $0x10] sm:$0xff]  ;;  %v2012_v25 = vld [vmem:[%s2723_s1 + $0x1fc] ss:$12 sps:$4 sm:$0xff]   ;;  %v2038_v27 = vld [vmem:[%s2723_s1 + $0x3e0] ss:$12 sps:$4 sm:$0xff]  }
  0x1d   :  { %v2422_v24 = vpack.c.bf16 %v23_v21, %v23_v21  ;;  %v2017_v29 = vld [vmem:[%s2723_s1 + $0x214] ss:$12 sps:$4 sm:$0xff]   ;;  %v2015_v32 = vld [vmem:[%s2723_s1 + $0x210] ss:$12 sps:$4 sm:$0xff]   ;;  %v2044_v34 = vld [vmem:[%s2723_s1 + $0x338] ss:$12 sps:$4 sm:$0xff]  }
  0x1e   :  { %1812 = vmatpush3.bf16.msra.mxu1 %v1979_v37  ;;  %v2039_v30 = vld [vmem:[%s2723_s1 + $0x320] ss:$12 sps:$4 sm:$0xff]   ;;  %v2049_v37 = vld [vmem:[%s2723_s1 + $0x350] ss:$12 sps:$4 sm:$0xff]   ;;  %v2053_v39 = vld [vmem:[%s2723_s1 + $0x428] ss:$12 sps:$4 sm:$0xff]  }
  0x1f   :  { %1051 = vmatpush1.bf16.msra.mxu0 %v1943_v26  ;;  %1813 = vmatprep.subr.bf16.mxu1 %v1982_v38  ;;  %v2034_v26 = vld [vmem:[%s2723_s1 + $0x308] ss:$12 sps:$4 sm:$0xff]   ;;  %v2027_v38 = vld [vmem:[%s2723_s1 + $0x244] ss:$12 sps:$4 sm:$0xff]   ;;  %v2092_v21 = vld [vmem:[%s2723_s1 + $0x3c0] ss:$12 sps:$4 sm:$0xff]  }
  0x20   :  { %1052 = vmatprep.subr.bf16.mxu0 %v1944_v28  ;;  %v2010_v28 = vld [vmem:[%s2723_s1 + $0x1f8] ss:$12 sps:$4 sm:$0xff]   ;;  %v2054_v41 = vld [vmem:[%s2723_s1 + $0x368] ss:$12 sps:$4 sm:$0xff]  }
  0x21   :  { %v2063_v49 = vld [vmem:[%s2723_s1 + $0x458] ss:$12 sps:$4 sm:$0xff]  }
  0x22   :  { %1814 = vmatpush3.bf16.msra.mxu1 %v1984_v43  ;;  %v2032_v43 = vld [vmem:[%s2723_s1 + $0x25c] ss:$12 sps:$4 sm:$0xff]   ;;  %v2082_v11 = vld [vmem:[%s2723_s1 + $0x364] ss:$12 sps:$4 sm:$0xff]  }
  0x23   :  { %1053 = vmatpush1.bf16.msra.mxu0 %v1948_v31  ;;  %1815 = vmatprep.subr.bf16.mxu1 %v1988_v44  ;;  %v2043_v31 = vld [vmem:[%s2723_s1 + $0x3f8] ss:$12 sps:$4 sm:$0xff]   ;;  %v2058_v44 = vld [vmem:[%s2723_s1 + $0x440] ss:$12 sps:$4 sm:$0xff]  }
  0x24   :  { %1054 = vmatprep.subr.bf16.mxu0 %v1950_v33  ;;  %v2022_v33 = vld [vmem:[%s2723_s1 + $0x22c] ss:$12 sps:$4 sm:$0xff]  }
  0x26   :  { %1816 = vmatpush3.bf16.msra.mxu1 %v1989_v47  ;;  %v2059_v47 = vld [vmem:[%s2723_s1 + $0x380] ss:$12 sps:$4 sm:$0xff]  }
  0x27   :  { %1055 = vmatpush1.bf16.msra.mxu0 %v1953_v35  ;;  %1823 = vmatprep.subr.bf16.mxu1 %v1993_v48  ;;  %v2048_v35 = vld [vmem:[%s2723_s1 + $0x410] ss:$12 sps:$4 sm:$0xff]   ;;  %v2037_v48 = vld [vmem:[%s2723_s1 + $0x274] ss:$12 sps:$4 sm:$0xff]  }
  0x28   :  { %1056 = vmatprep.subr.bf16.mxu0 %v1955_v36  ;;  %v2020_v36 = vld [vmem:[%s2723_s1 + $0x228] ss:$12 sps:$4 sm:$0xff]  }
  0x29   :  { %1233 = vmatmul.mubr.bf16.vlgmr.msra.gmra.mrb[4].mxu1 %v28_v53 }
  0x2a   :  { %1824 = vmatpush3.bf16.msra.mxu1 %v1994_v51  ;;  %1272 = vmatprep.mubr.bf16.mxu1 %v31_v13  ;;  %v2064_v51 = vld [vmem:[%s2723_s1 + $0x398] ss:$12 sps:$4 sm:$0xff]  }
  0x2b   :  { %1057 = vmatpush1.bf16.msra.mxu0 %v1958_v40  ;;  %1825 = vmatprep.subr.bf16.mxu1 %v1998_v54  ;;  %v2025_v40 = vld [vmem:[%s2723_s1 + $0x240] ss:$12 sps:$4 sm:$0xff]   ;;  %v2040_v54 = vld [vmem:[%s2723_s1 + $0x288] ss:$12 sps:$4 sm:$0xff]  }
  0x2c   :  { %1058 = vmatprep.subr.bf16.mxu0 %v1960_v42  ;;  %v26_v42 = vld [vmem:[%s2724_s0 + $0x28] sm:$0xff] }
  0x2e   :  { %1826 = vmatpush3.bf16.msra.mxu1 %v1999_v57  ;;  %v2047_v57 = vld [vmem:[%s2723_s1 + $0x2a4] ss:$12 sps:$4 sm:$0xff]  }
  0x2f   :  { %1059 = vmatpush1.bf16.msra.mxu0 %v1963_v45  ;;  %1827 = vmatprep.subr.bf16.mxu1 %v2003_v58  ;;  %v33_v45 = vpack.c.bf16 %v26_v42, %v26_v42  ;;  %v2045_v58 = vld [vmem:[%s2723_s1 + $0x2a0] ss:$12 sps:$4 sm:$0xff]   ;;  %v2122_v42 = vld [vmem:[%s2725_s3 + $0x58] sm:$0xff]  }
  0x30   :  { %1060 = vmatprep.subr.bf16.mxu0 %v1965_v46  ;;  %v2030_v46 = vld [vmem:[%s2723_s1 + $0x258] ss:$12 sps:$4 sm:$0xff]  }
  0x32   :  { %1828 = vmatpush3.bf16.msra.mxu1 %v2004_v61  ;;  %v2052_v61 = vld [vmem:[%s2723_s1 + $0x2bc] ss:$12 sps:$4 sm:$0xff]  }
  0x33   :  { %1061 = vmatpush1.bf16.msra.mxu0 %v1968_v50  ;;  %1829 = vmatprep.subr.bf16.mxu1 %v2008_v62  ;;  %v2035_v50 = vld [vmem:[%s2723_s1 + $0x270] ss:$12 sps:$4 sm:$0xff]   ;;  %v2140_v62 = vmov 0.0  }
  0x34   :  { %1062 = vmatprep.subr.bf16.mxu0 %v1970_v52  ;;  %v2042_v52 = vld [vmem:[%s2723_s1 + $0x28c] ss:$12 sps:$4 sm:$0xff]  }
  0x36   :  { %1830 = vmatpush3.bf16.msra.mxu1 %v2009_v1  ;;  %v2055_v1 = vld [vmem:[%s2723_s1 + $0x2d0] ss:$12 sps:$4 sm:$0xff]  }
  0x37   :  { %1063 = vmatpush1.bf16.msra.mxu0 %v1973_v55  ;;  %1831 = vmatprep.subr.bf16.mxu1 %v2013_v2  ;;  %v2069_v55 = vld [vmem:[%s2723_s1 + $0x3b0] ss:$12 sps:$4 sm:$0xff]   ;;  %v2062_v2 = vld [vmem:[%s2723_s1 + $0x2ec] ss:$12 sps:$4 sm:$0xff]  }
  0x38   :  { %1064 = vmatprep.subr.bf16.mxu0 %v1975_v56  ;;  %v25_v56 = vld [vmem:[%s2724_s0 + $0x20] sm:$0xff] }
  0x3a   :  { %1832 = vmatpush3.bf16.msra.mxu1 %v2014_v5  ;;  %v2065_v5 = vld [vmem:[%s2723_s1 + $0x300] ss:$12 sps:$4 sm:$0xff]  }
  0x3b   :  { %1065 = vmatpush1.bf16.msra.mxu0 %v1978_v59  ;;  %1833 = vmatprep.subr.bf16.mxu1 %v2018_v6  ;;  %v2524_v59 = vpack.c.bf16 %v25_v56, %v25_v56  ;;  %v2070_v6 = vld [vmem:[%s2723_s1 + $0x318] ss:$12 sps:$4 sm:$0xff]  }
  0x3c   :  { %1066 = vmatprep.subr.bf16.mxu0 %v1980_v60  ;;  %v2076_v60 = vld [vmem:[%s2723_s1 + $0x488] ss:$12 sps:$4 sm:$0xff]  }
  0x3e   :  { %1834 = vmatpush3.bf16.msra.mxu1 %v2019_v8  ;;  %v2073_v8 = vld [vmem:[%s2723_s1 + $0x330] ss:$12 sps:$4 sm:$0xff]  }
  0x3f   :  { %1067 = vmatpush1.bf16.msra.mxu0 %v1983_v63  ;;  %1835 = vmatprep.subr.bf16.mxu1 %v2023_v10  ;;  %v2050_v63 = vld [vmem:[%s2723_s1 + $0x2b8] ss:$12 sps:$4 sm:$0xff]   ;;  %v2077_v10 = vld [vmem:[%s2723_s1 + $0x348] ss:$12 sps:$4 sm:$0xff]  }
  0x40   :  { %1077 = vmatprep.subr.bf16.mxu0 %v1987_v0  ;;  %v2057_v0 = vld [vmem:[%s2723_s1 + $0x2d4] ss:$12 sps:$4 sm:$0xff]  }
  0x42   :  { %1069 = vmatmul.mubr.bf16.vlgmr.msra.gmra.mrb[0].mxu0 %v28_v53  ;;  %1836 = vmatpush3.bf16.msra.mxu1 %v2024_v14  ;;  %v2068_v53 = vld [vmem:[%s2723_s1 + $0x470] ss:$12 sps:$4 sm:$0xff]   ;;  %v2083_v14 = vld [vmem:[%s2723_s1 + $0x378] ss:$12 sps:$4 sm:$0xff]  }
  0x43   :  { %1078 = vmatpush1.bf16.msra.mxu0 %v1985_v3  ;;  %1109 = vmatprep.mubr.bf16.mxu0 %v31_v13  ;;  %v2060_v3 = vld [vmem:[%s2723_s1 + $0x2e8] ss:$12 sps:$4 sm:$0xff]  }
  0x44   :  { %1079 = vmatprep.subr.bf16.mxu0 %v1992_v4  ;;  %1837 = vmatprep.subr.bf16.mxu1 %v2028_v17  ;;  %v2067_v4 = vld [vmem:[%s2723_s1 + $0x304] ss:$12 sps:$4 sm:$0xff]   ;;  %v2085_v13 = vld [vmem:[%s2723_s1 + $0x37c] ss:$12 sps:$4 sm:$0xff]  }
  0x45   :  { %v2086_v17 = vld [vmem:[%s2723_s1 + $0x390] ss:$12 sps:$4 sm:$0xff]  }
  0x46   :  { %1838 = vmatpush3.bf16.msra.mxu1 %v2029_v20  ;;  %v2094_v20 = vld [vmem:[%s2723_s1 + $0x3c4] ss:$12 sps:$4 sm:$0xff]  }
  0x47   :  { %1080 = vmatpush1.bf16.msra.mxu0 %v1990_v7  ;;  %1845 = vmatprep.subr.bf16.mxu1 %v2033_v22  ;;  %v2075_v7 = vld [vmem:[%s2723_s1 + $0x334] ss:$12 sps:$4 sm:$0xff]   ;;  %v2097_v22 = vld [vmem:[%s2723_s1 + $0x3dc] ss:$12 sps:$4 sm:$0xff]  }
  0x48   :  { %1081 = vmatprep.subr.bf16.mxu0 %v1997_v9  ;;  %v2079_v9 = vld [vmem:[%s2723_s1 + $0x34c] ss:$12 sps:$4 sm:$0xff]  }
  0x49   :  { %1273 = vmatmul.mubr.bf16.vlgmr.msra.gmra.mrb[8].mxu1 %v2422_v24 }
  0x4a   :  { %1846 = vmatpush3.bf16.msra.mxu1 %v2034_v26  ;;  %1312 = vmatprep.mubr.bf16.mxu1 %v33_v45  ;;  %v2103_v26 = vld [vmem:[%s2723_s1 + $0x40c] ss:$12 sps:$4 sm:$0xff]  }
  0x4b   :  { %1082 = vmatpush1.bf16.msra.mxu0 %v1995_v12  ;;  %1847 = vmatprep.subr.bf16.mxu1 %v2038_v27  ;;  %v2080_v12 = vld [vmem:[%s2723_s1 + $0x360] ss:$12 sps:$4 sm:$0xff]   ;;  %v2101_v27 = vld [vmem:[%s2723_s1 + $0x408] ss:$12 sps:$4 sm:$0xff]  }
  0x4c   :  { %1083 = vmatprep.subr.bf16.mxu0 %v2002_v15  ;;  %v2088_v15 = vld [vmem:[%s2723_s1 + $0x394] ss:$12 sps:$4 sm:$0xff]  }
  0x4e   :  { %1848 = vmatpush3.bf16.msra.mxu1 %v2039_v30  ;;  %v2109_v30 = vld [vmem:[%s2723_s1 + $0x43c] ss:$12 sps:$4 sm:$0xff]  }
  0x4f   :  { %1084 = vmatpush1.bf16.msra.mxu0 %v2000_v18  ;;  %1849 = vmatprep.subr.bf16.mxu1 %v2043_v31  ;;  %v2091_v18 = vld [vmem:[%s2723_s1 + $0x3ac] ss:$12 sps:$4 sm:$0xff]  }
  0x50   :  { %1085 = vmatprep.subr.bf16.mxu0 %v2007_v19  ;;  %v2089_v19 = vld [vmem:[%s2723_s1 + $0x3a8] ss:$12 sps:$4 sm:$0xff]   ;;  %v2107_v31 = vld [vmem:[%s2723_s1 + $0x438] ss:$12 sps:$4 sm:$0xff]  }
  0x52   :  { %1850 = vmatpush3.bf16.msra.mxu1 %v2044_v34  ;;  %v2115_v34 = vld [vmem:[%s2723_s1 + $0x46c] ss:$12 sps:$4 sm:$0xff]  }
  0x53   :  { %1086 = vmatpush1.bf16.msra.mxu0 %v2005_v23  ;;  %1851 = vmatprep.subr.bf16.mxu1 %v2048_v35  ;;  %v2095_v23 = vld [vmem:[%s2723_s1 + $0x3d8] ss:$12 sps:$4 sm:$0xff]   ;;  %v2113_v35 = vld [vmem:[%s2723_s1 + $0x468] ss:$12 sps:$4 sm:$0xff]  }
  0x54   :  { %1087 = vmatprep.subr.bf16.mxu0 %v2012_v25  ;;  %v2098_v25 = vld [vmem:[%s2723_s1 + $0x3f0] ss:$12 sps:$4 sm:$0xff]  }
  0x56   :  { %1852 = vmatpush3.bf16.msra.mxu1 %v2049_v37  ;;  %v2117_v37 = vld [vmem:[%s2725_s3] sm:$0xff]  }
  0x57   :  { %1088 = vmatpush1.bf16.msra.mxu0 %v2010_v28  ;;  %1853 = vmatprep.subr.bf16.mxu1 %v2053_v39  ;;  %v2106_v28 = vld [vmem:[%s2723_s1 + $0x424] ss:$12 sps:$4 sm:$0xff]   ;;  %v2119_v39 = vld [vmem:[%s2725_s3 + $0x8] sm:$0xff]  }
  0x58   :  { %1089 = vmatprep.subr.bf16.mxu0 %v2017_v29  ;;  %v2104_v29 = vld [vmem:[%s2723_s1 + $0x420] ss:$12 sps:$4 sm:$0xff]  }
  0x5a   :  { %1854 = vmatpush3.bf16.msra.mxu1 %v2054_v41  ;;  %v2121_v41 = vld [vmem:[%s2725_s3 + $0x10] sm:$0xff]  }
  0x5b   :  { %1090 = vmatpush1.bf16.msra.mxu0 %v2015_v32  ;;  %1855 = vmatprep.subr.bf16.mxu1 %v2058_v44  ;;  %v2112_v32 = vld [vmem:[%s2723_s1 + $0x454] ss:$12 sps:$4 sm:$0xff]  }
  0x5c   :  { %1091 = vmatprep.subr.bf16.mxu0 %v2022_v33  ;;  %v2110_v33 = vld [vmem:[%s2723_s1 + $0x450] ss:$12 sps:$4 sm:$0xff]  }
  0x5e   :  { %1856 = vmatpush3.bf16.msra.mxu1 %v2059_v47 }
  0x5f   :  { %1092 = vmatpush1.bf16.msra.mxu0 %v2020_v36  ;;  %1857 = vmatprep.subr.bf16.mxu1 %v2063_v49  ;;  %v2116_v36 = vld [vmem:[%s2725_s3 + $0x40] sm:$0xff]  }
  0x60   :  { %1093 = vmatprep.subr.bf16.mxu0 %v2027_v38  ;;  %v2118_v38 = vld [vmem:[%s2725_s3 + $0x48] sm:$0xff]  }
  0x62   :  { %1858 = vmatpush3.bf16.msra.mxu1 %v2064_v51 }
  0x63   :  { %1094 = vmatpush1.bf16.msra.mxu0 %v2025_v40  ;;  %1859 = vmatprep.subr.bf16.mxu1 %v2068_v53  ;;  %v2120_v40 = vld [vmem:[%s2725_s3 + $0x50] sm:$0xff]   ;;  %v233_v53 = vlaneseq }
  0x64   :  { %1095 = vmatprep.subr.bf16.mxu0 %v2032_v43 }
  0x65   :  { %v234_v56 = vshrl.u32 %v233_v53, 7 }
  0x66   :  { %1860 = vmatpush3.bf16.msra.mxu1 %v2069_v55  ;;  %v2125_v55 = vld [vmem:[%s2725_s3 + $0x20] sm:$0xff]  }
  0x67   :  { %1096 = vmatpush1.bf16.msra.mxu0 %v2030_v46  ;;  %1893 = vmatprep.subr.bf16.mxu1 %v2140_v62 }
  0x68   :  { %1097 = vmatprep.subr.bf16.mxu0 %v2037_v48 }
  0x69   :  { %1313 = vmatmul.mubr.bf16.vlgmr.msra.gmra.mrb[12].mxu1 %v2524_v59 }
  0x6a   :  { %1894 = vmatpush3.bf16.msra.mxu1 %v2076_v60  ;;  %1895 = vmatprep.mubr.msk.bf16.mxu1 %vm2141_vm1, %v2140_v62  ;;  %v231_v60 = vld [vmem:[%s2726_s2] sm:$0x7] }
  0x6b   :  { %1098 = vmatpush1.bf16.msra.mxu0 %v2035_v50  ;;  %1869 = vmatprep.subr.bf16.mxu1 %v2116_v36 }
  0x6c   :  { %1099 = vmatprep.subr.bf16.mxu0 %v2042_v52  ;;  %v2123_v52 = vld [vmem:[%s2725_s3 + $0x18] sm:$0xff]  }
  0x6f   :  { %1100 = vmatpush1.bf16.msra.mxu0 %v2040_v54  ;;  %v2124_v54 = vld [vmem:[%s2725_s3 + $0x60] sm:$0xff]  }
  0x70   :  { %1101 = vmatprep.subr.bf16.mxu0 %v2047_v57  ;;  %v2126_v57 = vld [vmem:[%s2725_s3 + $0x68] sm:$0xff]  }
  0x71   :  { %1896 = vmatmul.mubr.msk.bf16.vlgmr.msra.gmra.mrb[16].mxu1 %vm1032_vm0, %v2217_v16  ;;  %v2072_v16 = vld [vmem:[%s2723_s1 + $0x31c] ss:$12 sps:$4 sm:$0xff]  }
  0x72   :  { %1870 = vmatpush3.bf16.msra.mxu1 %v2117_v37 }
  0x73   :  { %1102 = vmatpush1.bf16.msra.mxu0 %v2045_v58  ;;  %1871 = vmatprep.subr.bf16.mxu1 %v2118_v38  ;;  %v2127_v58 = vld [vmem:[%s2725_s3 + $0x28] sm:$0xff]  }
  0x74   :  { %1103 = vmatprep.subr.bf16.mxu0 %v2052_v61  ;;  %v2128_v61 = vld [vmem:[%s2725_s3 + $0x70] sm:$0xff]  }
  0x76   :  { %1872 = vmatpush3.bf16.msra.mxu1 %v2119_v39 }
  0x77   :  { %1104 = vmatpush1.bf16.msra.mxu0 %v2050_v63  ;;  %1873 = vmatprep.subr.bf16.mxu1 %v2120_v40  ;;  %v2129_v63 = vld [vmem:[%s2725_s3 + $0x30] sm:$0xff]  }
  0x78   :  { %1105 = vmatprep.subr.bf16.mxu0 %v2057_v0 }
  0x7a   :  { %1874 = vmatpush3.bf16.msra.mxu1 %v2121_v41 }
  0x7b   :  { %1106 = vmatpush1.bf16.msra.mxu0 %v2055_v1  ;;  %1875 = vmatprep.subr.bf16.mxu1 %v2122_v42  ;;  %v2130_v1 = vld [vmem:[%s2725_s3 + $0x78] sm:$0xff]  }
  0x7c   :  { %1107 = vmatprep.subr.bf16.mxu0 %v2062_v2  ;;  %v2131_v2 = vld [vmem:[%s2725_s3 + $0x38] sm:$0xff]  }
  0x7e   :  { %1876 = vmatpush3.bf16.msra.mxu1 %v2123_v52 }
  0x7f   :  { %1108 = vmatpush1.bf16.msra.mxu0 %v2060_v3  ;;  %1877 = vmatprep.subr.bf16.mxu1 %v2124_v54 }
  0x80   :  { %1118 = vmatprep.subr.bf16.mxu0 %v2067_v4 }
  0x82   :  { %1110 = vmatmul.mubr.bf16.vlgmr.msra.gmra.mrb[0].mxu0 %v2422_v24  ;;  %v2100_v24 = vld [vmem:[%s2723_s1 + $0x3f4] ss:$12 sps:$4 sm:$0xff]   ;;  %1878 = vmatpush3.bf16.msra.mxu1 %v2125_v55 }
  0x83   :  { %1119 = vmatpush1.bf16.msra.mxu0 %v2065_v5  ;;  %1150 = vmatprep.mubr.bf16.mxu0 %v33_v45 }
  0x84   :  { %1120 = vmatprep.subr.bf16.mxu0 %v2072_v16  ;;  %1879 = vmatprep.subr.bf16.mxu1 %v2126_v57 }
  0x86   :  { %1880 = vmatpush3.bf16.msra.mxu1 %v2127_v58 }
  0x87   :  { %1121 = vmatpush1.bf16.msra.mxu0 %v2070_v6  ;;  %1881 = vmatprep.subr.bf16.mxu1 %v2128_v61 }
  0x88   :  { %1122 = vmatprep.subr.bf16.mxu0 %v2075_v7 }
  0x8a   :  { %1882 = vmatpush3.bf16.msra.mxu1 %v2129_v63 }
  0x8b   :  { %1123 = vmatpush1.bf16.msra.mxu0 %v2073_v8  ;;  %1883 = vmatprep.subr.bf16.mxu1 %v2130_v1 }
  0x8c   :  { %1124 = vmatprep.subr.bf16.mxu0 %v2079_v9 }
  0x8e   :  { %1884 = vmatpush3.bf16.msra.mxu1 %v2131_v2 }
  0x8f   :  { %1125 = vmatpush1.bf16.msra.mxu0 %v2077_v10  ;;  %1899 = vmatprep.subr.bf16.mxu1 %v2140_v62 }
  0x90   :  { %1126 = vmatprep.subr.bf16.mxu0 %v2082_v11 }
  0x93   :  { %1127 = vmatpush1.bf16.msra.mxu0 %v2080_v12 }
  0x94   :  { %1128 = vmatprep.subr.bf16.mxu0 %v2085_v13 }
  0x97   :  { %1129 = vmatpush1.bf16.msra.mxu0 %v2083_v14 }
  0x98   :  { %1130 = vmatprep.subr.bf16.mxu0 %v2088_v15 }
  0x9b   :  { %1131 = vmatpush1.bf16.msra.mxu0 %v2086_v17 }
  0x9c   :  { %1132 = vmatprep.subr.bf16.mxu0 %v2091_v18 }
  0x9f   :  { %1133 = vmatpush1.bf16.msra.mxu0 %v2089_v19 }
  0xa0   :  { %1134 = vmatprep.subr.bf16.mxu0 %v2094_v20 }
  0xa3   :  { %1135 = vmatpush1.bf16.msra.mxu0 %v2092_v21  ;;  %v235_v21 = vsub.s32 0, %v234_v56 }
  0xa4   :  { %1136 = vmatprep.subr.bf16.mxu0 %v2097_v22  ;;  %v239_v22 = vsub.s32 1, %v234_v56 }
  0xa7   :  { %1137 = vmatpush1.bf16.msra.mxu0 %v2095_v23  ;;  %v236_v23 = vrot.slane %v231_v60, %v235_v21 }
  0xa8   :  { %1138 = vmatprep.subr.bf16.mxu0 %v2100_v24  ;;  %v240_v24 = vrot.slane %v231_v60, %v239_v22 }
  0xab   :  { %1139 = vmatpush1.bf16.msra.mxu0 %v2098_v25 }
  0xac   :  { %1140 = vmatprep.subr.bf16.mxu0 %v2103_v26 }
  0xaf   :  { %1141 = vmatpush1.bf16.msra.mxu0 %v2101_v27 }
  0xb0   :  { %1142 = vmatprep.subr.bf16.mxu0 %v2106_v28 }
  0xb3   :  { %1143 = vmatpush1.bf16.msra.mxu0 %v2104_v29 }
  0xb4   :  { %1144 = vmatprep.subr.bf16.mxu0 %v2109_v30 }
  0xb7   :  { %1145 = vmatpush1.bf16.msra.mxu0 %v2107_v31 }
  0xb8   :  { %1146 = vmatprep.subr.bf16.mxu0 %v2112_v32 }
  0xbb   :  { %1147 = vmatpush1.bf16.msra.mxu0 %v2110_v33  ;;  %v2132_v33 = vld [vmem:[%s2725_s3 + $0x80] ss:$0 sps:$4 sm:$0x33]  }
  0xbc   :  { %1148 = vmatprep.subr.bf16.mxu0 %v2115_v34  ;;  %v1511_v38 = vsel %vm1509_vm2, %v2132_v33, 0 }
  0xbf   :  { %1149 = vmatpush1.bf16.msra.mxu0 %v2113_v35 }
  0xc2   :  { %1151 = vmatmul.mubr.bf16.vlgmr.msra.gmra.mrb[0].mxu0 %v2524_v59  ;;  %v243_v59 = vsub.s32 2, %v234_v56 }
  0xc4   :  { %v244_v0 = vrot.slane %v231_v60, %v243_v59 }
  0xdc   :  { %v2672_v43 = vpop.f32.mrb[0].mxu1 }
  0xdd   :  { %v2674_v44 = vpop.f32.mrb[1].mxu1 }
  0xde   :  { %v1197_v45 = vpop.f32.mrb[2].mxu1 }
  0xdf   :  { %v1198_v46 = vpop.f32.mrb[3].mxu1 }
  0xe0   :  { %v1782_v46 = vld [vmem:[%s2727_s4] ss:$0 sm:$0xff] }
  0xfc   :  { %v1817_v47 = vpop.f32.mrb[4].mxu1 }
  0xfd   :  { %v1818_v48 = vpop.f32.mrb[5].mxu1 }
  0xfe   :  { %v1819_v49 = vadd.f32 %v1818_v48, %v1817_v47  ;;  %v1820_v50 = vpop.f32.mrb[6].mxu1 }
  0xff   :  { %v1821_v51 = vpop.f32.mrb[7].mxu1 }
 0x100   :  { %v1235_v3 = vadd.f32 %v1819_v49, %v244_v0 }
 0x11c   :  { %v1839_v4 = vpop.f32.mrb[8].mxu1 }
 0x11d   :  { %v1840_v5 = vpop.f32.mrb[9].mxu1 }
 0x11e   :  { %v1841_v16 = vadd.f32 %v1840_v5, %v1839_v4  ;;  %v1842_v6 = vpop.f32.mrb[10].mxu1 }
 0x11f   :  { %v1843_v7 = vpop.f32.mrb[11].mxu1 }
 0x120   :  { %v1275_v8 = vadd.f32 %v1841_v16, %v1235_v3 }
 0x13c   :  { %v1861_v9 = vpop.f32.mrb[12].mxu1 }
 0x13d   :  { %v1862_v10 = vpop.f32.mrb[13].mxu1 }
 0x13e   :  { %v1863_v11 = vadd.f32 %v1862_v10, %v1861_v9  ;;  %v1864_v12 = vpop.f32.mrb[14].mxu1 }
 0x13f   :  { %v1865_v13 = vpop.f32.mrb[15].mxu1 }
 0x140   :  { %v1315_v14 = vadd.f32 %v1863_v11, %v1275_v8 }
 0x144   :  { %v1354_v15 = vpop.f32.mrb[16].mxu1 }
 0x145   :  { %v1355_v17 = vadd.f32 %v1354_v15, %v1315_v14  ;;  %v1897_v18 = vpop.f32.mrb[17].mxu1 }
 0x146   :  { %v1357_v19 = vpop.f32.mrb[18].mxu1 }
 0x147   :  { %v1898_v20 = vpop.f32.mrb[19].mxu1 }
 0x195   :  { %v1152_v25 = vpop.f32.mrb[0].mxu0 }
 0x196   :  { %v1905_v26 = vadd.f32 %v1152_v25, %v236_v23  ;;  %v1154_v27 = vpop.f32.mrb[1].mxu0 }
 0x197   :  { %v1907_v28 = vadd.f32 %v1154_v27, %v240_v24  ;;  %v1156_v29 = vpop.f32.mrb[2].mxu0 }
 0x198   :  { %v1906_v30 = vadd.f32 %v1905_v26, %v2672_v43  ;;  %v1157_v31 = vpop.f32.mrb[3].mxu0 }
 0x199   :  { %v1908_v32 = vadd.f32 %v1907_v28, %v2674_v44 }
 0x19a   :  { %2133 = vtanh.f32 %v1906_v30 }
 0x19b   :  { %2135 = vtanh.f32 %v1908_v32 }
 0x19c   :  { %2137 = vtanh.f32 %v1355_v17 }
 0x1a4   :  { %v2134_v34 = vpop.eup %2133 }
 0x1a5   :  { %v2136_v35 = vpop.eup %2135  ;;  %v1363_v37 = vpack.c.bf16 %v2134_v34, %v2134_v34 }
 0x1a6   :  { %v1364_v36 = vpack.c.bf16 %v2136_v35, %v2136_v35  ;;  %v2138_v39 = vpop.eup %2137 }
 0x1a7   :  { %v1365_v40 = vpack.c.bf16 %v2138_v39, %v2138_v39 }
 0x1a8   :  { %1545 = vmatprep.mubr.bf16.mxu1 %v1364_v36 }
 0x1a9   :  { %1546 = vmatmul.mubr.bf16.vlgmr.msra.gmra.mrb[20].mxu1 %v1363_v37 }
 0x1aa   :  { %1900 = vmatpush3.bf16.msra.mxu1 %v1511_v38  ;;  %1901 = vmatprep.mubr.msk.bf16.mxu1 %vm2141_vm1, %v2140_v62 }
 0x1b1   :  { %1902 = vmatmul.mubr.msk.bf16.vlgmr.msra.gmra.mrb[24].mxu1 %vm1505_vm3, %v1365_v40 }
 0x27c   :  { %v1885_v41 = vpop.f32.mrb[20].mxu1 }
 0x27d   :  { %v1886_v42 = vpop.f32.mrb[21].mxu1 }
 0x27e   :  { %v1887_v43 = vadd.f32 %v1886_v42, %v1885_v41  ;;  %v1888_v44 = vpop.f32.mrb[22].mxu1 }
 0x27f   :  { %v1889_v45 = vpop.f32.mrb[23].mxu1 }
 0x280   :  { %v1548_v47 = vadd.f32 %v1887_v43, %v1782_v46 }
 0x284   :  { %v1587_v48 = vpop.f32.mrb[24].mxu1 }
 0x285   :  { %v1903_v49 = vpop.f32.mrb[25].mxu1  ;;  %v1588_v50 = vadd.f32 %v1587_v48, %v1548_v47 }
 0x286   :  { %v1590_v51 = vpop.f32.mrb[26].mxu1 }
 0x287   :  { %v1904_v52 = vpop.f32.mrb[27].mxu1  ;;  %1593 = vxpose.xlu0.b32.start.end [1/1] (short) (narrow) %v1588_v50, 16 }
 0x307   :  { %v1609_v62 = vpop.trf.xlu0 }
 0x308   :  { %1626 = vst.msk [vmem:[%s2728_s5] sm:$0xff] %vm1625_vm4, %v1609_v62 }
 0x30b   :  { %v1610_v53 = vpop.trf.xlu0 }
 0x30c   :  { %1628 = vst.msk [vmem:[%s2728_s5 + $0x8] sm:$0x3] %vm1627_vm5, %v1610_v53 }

</bundles_post_ra>
